<compile_context>
chip_gen: v6e
topology: v6e:2x2x1
jax: 0.10.0
libtpu: 0.0.40
codegen_flags: <defaults>
</compile_context>

<pallas_src>
import jax
import jax.numpy as jnp
from jax import lax
from jax.experimental import pallas as pl
from jax.experimental.pallas import tpu as pltpu


KH = KW = 3
CIN = 3
COUT = 64
K_PAD = 32          # 27 conv taps zero-padded to 32 for the MXU K dim


def _round_up(v, m):
    return (v + m - 1) // m * m


# --------------------------------------------------------------------------
# Kernel 1: conv1 as an im2col MXU matmul + ReLU + global-average-pool.
# grid = (batch, pixel_strips); each step: (tile_p, 32) @ (32, 64) -> ReLU ->
# partial sum over pixels into a resident (1, 64) accumulator.
# --------------------------------------------------------------------------
def _make_conv_gap_kernel(inv_num_pixels):
    def kernel(p_ref, w_ref, emb_ref, acc_ref):
        s = pl.program_id(1)

        @pl.when(s == 0)
        def _init():
            acc_ref[...] = jnp.zeros_like(acc_ref)

        h = jnp.dot(p_ref[...], w_ref[...],
                    preferred_element_type=jnp.float32)       # (tile_p, 64) f32
        h = jnp.maximum(h, 0.0)                               # ReLU
        acc_ref[...] += jnp.sum(h, axis=0, keepdims=True)     # GAP partial sum

        @pl.when(s == pl.num_programs(1) - 1)
        def _finalize():
            emb_ref[...] = acc_ref[...] * inv_num_pixels      # mean over pixels
    return kernel


def _im2col_patches(x_nchw):
    """NCHW -> (N, H*W, 32) bf16 patches; K ordering = (kh, kw, cin)."""
    N, C, H, W = x_nchw.shape
    xp = jnp.pad(x_nchw, ((0, 0), (0, 0), (1, 1), (1, 1)))
    taps = [xp[:, :, kh:kh + H, kw:kw + W]
            for kh in range(KH) for kw in range(KW)]          # 9 x (N, C, H, W)
    t = jnp.stack(taps, axis=1).reshape(N, KH * KW * C, H * W)
    t = jnp.transpose(t, (0, 2, 1))                           # (N, P, 27)
    t = jnp.pad(t, ((0, 0), (0, 0), (0, K_PAD - KH * KW * C)))
    return t.astype(jnp.bfloat16)


def _pick_pixel_tile(num_pixels, target):
    if num_pixels <= target:
        return num_pixels
    for t in range(min(target, num_pixels), 15, -1):
        if num_pixels % t == 0 and t % 16 == 0:
            return t
    return num_pixels


def backbone_forward(x_nchw, conv_w, *, pixel_tile=128):
    """conv1 -> ReLU -> global average pool.  x_nchw: (N, 3, H, W)."""
    x_nchw = x_nchw.astype(jnp.float32)
    N, C, H, W = x_nchw.shape
    P = H * W

    patches = _im2col_patches(x_nchw)                         # (N, P, 32) bf16
    w_flat = conv_w.reshape(KH * KW * C, COUT)                # (27, 64)
    w_pad = jnp.pad(w_flat, ((0, K_PAD - w_flat.shape[0]), (0, 0)))
    w_pad = w_pad.astype(jnp.bfloat16)                        # (32, 64)

    tp = _pick_pixel_tile(P, pixel_tile)
    num_strips = P // tp

    emb = pl.pallas_call(
        _make_conv_gap_kernel(1.0 / P),
        out_shape=jax.ShapeDtypeStruct((N, 1, COUT), jnp.float32),
        grid_spec=pltpu.PrefetchScalarGridSpec(
            num_scalar_prefetch=0,
            grid=(N, num_strips),
            in_specs=[
                pl.BlockSpec((None, tp, K_PAD), lambda n, s: (n, s, 0)),
                pl.BlockSpec((K_PAD, COUT), lambda n, s: (0, 0)),
            ],
            out_specs=pl.BlockSpec((None, 1, COUT), lambda n, s: (n, 0, 0)),
            scratch_shapes=[pltpu.VMEM((1, COUT), jnp.float32)],
        ),
        compiler_params=pltpu.CompilerParams(
            dimension_semantics=("parallel", "arbitrary")),
    )(patches, w_pad)
    return emb.reshape(N, COUT)


# --------------------------------------------------------------------------
# Kernel 2: projection MLP (lane-padded, BatchNorm folded into one FMA).
#   Linear(in_f, hidden) -> BatchNorm1d(hidden) [train-mode batch stats]
#   -> ReLU -> Linear(hidden, emb)
# --------------------------------------------------------------------------
def mlp_kernel(x_ref, w1_ref, b1_ref, g_ref, beta_ref, w2_ref, b2_ref, out_ref):
    h = jnp.dot(x_ref[...], w1_ref[...],
                preferred_element_type=jnp.float32) + b1_ref[...]
    # BatchNorm1d (train mode): biased batch statistics, folded: hn = h*s + t.
    mean = jnp.mean(h, axis=0, keepdims=True)
    var = jnp.mean(jnp.square(h - mean), axis=0, keepdims=True)
    scale = g_ref[...] * lax.rsqrt(var + 1e-5)
    shift = beta_ref[...] - mean * scale
    r = jnp.maximum(h * scale + shift, 0.0)                   # ReLU
    out_ref[...] = jnp.dot(r, w2_ref[...],
                           preferred_element_type=jnp.float32) + b2_ref[...]


def projection_forward(emb, w1, b1, gamma, beta, w2, b2):
    N, _ = emb.shape
    hidden = w1.shape[1]
    e_dim = w2.shape[1]
    h_pad = _round_up(hidden, 128)
    e_pad = _round_up(e_dim, 128)

    w1p = jnp.pad(w1, ((0, 0), (0, h_pad - hidden)))
    b1p = jnp.pad(b1.reshape(1, -1), ((0, 0), (0, h_pad - hidden)))
    gp = jnp.pad(gamma.reshape(1, -1), ((0, 0), (0, h_pad - hidden)))
    bp = jnp.pad(beta.reshape(1, -1), ((0, 0), (0, h_pad - hidden)))
    w2p = jnp.pad(w2, ((0, h_pad - hidden), (0, e_pad - e_dim)))
    b2p = jnp.pad(b2.reshape(1, -1), ((0, 0), (0, e_pad - e_dim)))

    out_p = pl.pallas_call(
        mlp_kernel,
        out_shape=jax.ShapeDtypeStruct((N, e_pad), jnp.float32),
        in_specs=[pl.BlockSpec(memory_space=pltpu.MemorySpace.VMEM)
                  for _ in range(7)],
        out_specs=pl.BlockSpec(memory_space=pltpu.MemorySpace.VMEM),
    )(emb.astype(jnp.float32), w1p, b1p, gp, bp, w2p, b2p)
    return out_p[:, :e_dim]


# --------------------------------------------------------------------------
# Module forward + params
# --------------------------------------------------------------------------
def add_proj_head_forward(x, params, return_embedding=False):
    embedding = backbone_forward(x, params["conv_w"])
    if return_embedding:
        return embedding
    return projection_forward(embedding, params["w1"], params["b1"],
                              params["gamma"], params["beta"],
                              params["w2"], params["b2"])


def init_params(key, in_features=64, hidden_size=32, embedding_size=16):
    k0, k1, k2, k3, k4 = jax.random.split(key, 5)
    conv_w = 0.1 * jax.random.normal(k0, (KH, KW, CIN, COUT), jnp.float32)  # HWIO
    w1 = jax.random.normal(k1, (in_features, hidden_size), jnp.float32) / jnp.sqrt(in_features)
    b1 = 0.01 * jax.random.normal(k2, (hidden_size,), jnp.float32)
    gamma = jnp.ones((hidden_size,), jnp.float32)        # BatchNorm1d weight
    beta = jnp.zeros((hidden_size,), jnp.float32)        # BatchNorm1d bias
    w2 = jax.random.normal(k3, (hidden_size, embedding_size), jnp.float32) / jnp.sqrt(hidden_size)
    b2 = 0.01 * jax.random.normal(k4, (embedding_size,), jnp.float32)
    return {"conv_w": conv_w, "w1": w1, "b1": b1,
            "gamma": gamma, "beta": beta, "w2": w2, "b2": b2}


# --------------------------------------------------------------------------
# Pure-JAX references (for correctness spot-check)
# --------------------------------------------------------------------------
def _reference_backbone(x, conv_w):
    out = lax.conv_general_dilated(
        x.astype(jnp.float32), conv_w, window_strides=(1, 1), padding="SAME",
        dimension_numbers=("NCHW", "HWIO", "NCHW"))
    return jnp.mean(jnp.maximum(out, 0.0), axis=(2, 3))


def _reference_projection(emb, p):
    h = emb @ p["w1"] + p["b1"]
    mean = h.mean(0, keepdims=True)
    var = ((h - mean) ** 2).mean(0, keepdims=True)
    hn = (h - mean) * lax.rsqrt(var + 1e-5) * p["gamma"] + p["beta"]
    return jnp.maximum(hn, 0.0) @ p["w2"] + p["b2"]


if __name__ == "__main__":
    key = jax.random.PRNGKey(0)
    kx, kp = jax.random.split(key)
    # Small shapes: batch=2, channels=3 (module fixes Conv2d(3, 64)), spatial=16.
    x = jax.random.normal(kx, (2, 3, 16, 16), jnp.float32)   # NCHW like PyTorch
    params = init_params(kp)

    emb = add_proj_head_forward(x, params, return_embedding=True)
    out = add_proj_head_forward(x, params, return_embedding=False)
    jax.block_until_ready((emb, out))

    assert emb.shape == (2, 64)
    assert out.shape == (2, 16)
    assert bool(jnp.all(jnp.isfinite(emb))) and bool(jnp.all(jnp.isfinite(out)))

    # Correctness spot-checks (bf16 conv inputs -> loose tolerance on the
    # backbone; the f32 MLP is checked against an f32 reference on the same
    # embedding, so no BatchNorm amplification enters the comparison).
    emb_ref = _reference_backbone(x, params["conv_w"])
    assert float(jnp.max(jnp.abs(emb - emb_ref))) < 5e-2
    proj_ref = _reference_projection(emb, params)
    assert float(jnp.max(jnp.abs(out - proj_ref))) < 5e-2

    print("KERNEL_OK")
</pallas_src>

<mosaic_0001>
module attributes {stable_mosaic.version = 11 : i64} {
  func.func @kernel(%arg0: i32, %arg1: i32, %arg2: memref<1x128x32xbf16, #tpu.memory_space<vmem>>, %arg3: memref<32x64xbf16, #tpu.memory_space<vmem>>, %arg4: memref<1x1x64xf32, #tpu.memory_space<vmem>>, %arg5: memref<1x64xf32, #tpu.memory_space<vmem>>) attributes {dimension_semantics = [#tpu.dimension_semantics<parallel>, #tpu.dimension_semantics<arbitrary>], iteration_bounds = array<i64: 2, 2>, scalar_prefetch = 0 : i64, scratch_operands = 1 : i64, tpu.core_type = #tpu.core_type<tc>, window_params = [{transform_indices = @transform_0, window_bounds = array<i64: 1, 128, 32>}, {pipeline_mode = #tpu.pipeline_mode<synchronous>, transform_indices = @transform_1, window_bounds = array<i64: 32, 64>}, {transform_indices = @transform_2, window_bounds = array<i64: 1, 1, 64>}]} {
    %c0_i32 = arith.constant 0 : i32
    %0 = arith.cmpi eq, %arg1, %c0_i32 : i32
    %1 = arith.extui %0 : i1 to i32
    %c0_i32_0 = arith.constant 0 : i32
    %2 = arith.cmpi ne, %1, %c0_i32_0 : i32
    scf.if %2 {
      %cst_12 = arith.constant 0.000000e+00 : f32
      %17 = vector.broadcast %cst_12 : f32 to vector<1x64xf32>
      %c0_13 = arith.constant 0 : index
      %c0_14 = arith.constant 0 : index
      %18 = vector.load %arg5[%c0_13, %c0_14] : memref<1x64xf32, #tpu.memory_space<vmem>>, vector<1x64xf32>
      tpu.vector_store %arg5[%c0_13, %c0_14], %17 {strides = array<i32>} : memref<1x64xf32, #tpu.memory_space<vmem>>, vector<1x64xf32>,
    } else {
    }
    %c0 = arith.constant 0 : index
    %c0_1 = arith.constant 0 : index
    %c0_2 = arith.constant 0 : index
    %3 = vector.load %arg2[%c0, %c0_1, %c0_2] : memref<1x128x32xbf16, #tpu.memory_space<vmem>>, vector<1x128x32xbf16>
    %4 = vector.shape_cast %3 : vector<1x128x32xbf16> to vector<128x32xbf16>
    %c0_3 = arith.constant 0 : index
    %c0_4 = arith.constant 0 : index
    %5 = vector.load %arg3[%c0_3, %c0_4] : memref<32x64xbf16, #tpu.memory_space<vmem>>, vector<32x64xbf16>
    %cst = arith.constant dense<0.000000e+00> : vector<128x64xf32>
    %6 = tpu.matmul %4, %5, %cst {dimension_numbers = #tpu.dot_dimension_numbers<[1], [0], [0], [1], [0, 0, 1, 1], [], []>} : vector<128x32xbf16>, vector<32x64xbf16>, vector<128x64xf32> -> vector<128x64xf32>
    %cst_5 = arith.constant 0.000000e+00 : f32
    %7 = vector.broadcast %cst_5 : f32 to vector<128x64xf32>
    %8 = arith.maximumf %6, %7 : vector<128x64xf32>
    %c0_6 = arith.constant 0 : index
    %c0_7 = arith.constant 0 : index
    %9 = vector.load %arg5[%c0_6, %c0_7] : memref<1x64xf32, #tpu.memory_space<vmem>>, vector<1x64xf32>
    %cst_8 = arith.constant dense<0.000000e+00> : vector<64xf32>
    %10 = vector.multi_reduction <add>, %8, %cst_8 [0] : vector<128x64xf32> to vector<64xf32>
    %11 = vector.shape_cast %10 : vector<64xf32> to vector<1x64xf32>
    %12 = arith.addf %9, %11 : vector<1x64xf32>
    %c0_9 = arith.constant 0 : index
    %c0_10 = arith.constant 0 : index
    %13 = vector.load %arg5[%c0_9, %c0_10] : memref<1x64xf32, #tpu.memory_space<vmem>>, vector<1x64xf32>
    tpu.vector_store %arg5[%c0_9, %c0_10], %12 {strides = array<i32>} : memref<1x64xf32, #tpu.memory_space<vmem>>, vector<1x64xf32>,
    %c1_i32 = arith.constant 1 : i32
    %14 = arith.cmpi eq, %arg1, %c1_i32 : i32
    %15 = arith.extui %14 : i1 to i32
    %c0_i32_11 = arith.constant 0 : i32
    %16 = arith.cmpi ne, %15, %c0_i32_11 : i32
    scf.if %16 {
      %c0_12 = arith.constant 0 : index
      %c0_13 = arith.constant 0 : index
      %17 = vector.load %arg5[%c0_12, %c0_13] : memref<1x64xf32, #tpu.memory_space<vmem>>, vector<1x64xf32>
      %cst_14 = arith.constant 3.906250e-03 : f32
      %18 = vector.broadcast %cst_14 : f32 to vector<1x64xf32>
      %19 = arith.mulf %17, %18 : vector<1x64xf32>
      %c0_15 = arith.constant 0 : index
      %c0_16 = arith.constant 0 : index
      %c0_17 = arith.constant 0 : index
      %20 = vector.load %arg4[%c0_15, %c0_16, %c0_17] : memref<1x1x64xf32, #tpu.memory_space<vmem>>, vector<1x1x64xf32>
      %21 = vector.shape_cast %20 : vector<1x1x64xf32> to vector<1x64xf32>
      %22 = vector.shape_cast %19 : vector<1x64xf32> to vector<1x1x64xf32>
      tpu.vector_store %arg4[%c0_15, %c0_16, %c0_17], %22 {strides = array<i32>} : memref<1x1x64xf32, #tpu.memory_space<vmem>>, vector<1x1x64xf32>,
    } else {
    }
    return
  }
  func.func @transform_0(%arg0: i32, %arg1: i32) -> (i32, i32, i32) {
    %c0_i32 = arith.constant 0 : i32
    %c0_i32_0 = arith.constant 0 : i32
    return %arg0, %arg1, %c0_i32 : i32, i32, i32
  }
  func.func @transform_1(%arg0: i32, %arg1: i32) -> (i32, i32) {
    %c0_i32 = arith.constant 0 : i32
    %c0_i32_0 = arith.constant 0 : i32
    %c0_i32_1 = arith.constant 0 : i32
    return %c0_i32, %c0_i32_0 : i32, i32
  }
  func.func @transform_2(%arg0: i32, %arg1: i32) -> (i32, i32, i32) {
    %c0_i32 = arith.constant 0 : i32
    %c0_i32_0 = arith.constant 0 : i32
    %c0_i32_1 = arith.constant 0 : i32
    return %arg0, %c0_i32, %c0_i32_0 : i32, i32, i32
  }
}

</mosaic_0001>

<bundles_post_ra>
// kernel: tpu_custom_call.1
= control target key start
LH: loop header
LB: loop body
LE: loop exit
PB: predicated region body
PF: predicated region fallthrough
CT: control target
= control target key end

     0   :  { %7 = vsyncpa [#allocation4], 0  ;;  %s948_s0 = inlined_call_operand.vmem [shape: bf16[2,256,32], index: 0, kind: input, shape index: {}]   ;;  %s949_s1 = inlined_call_operand.vmem [shape: bf16[32,64], index: 1, kind: input, shape index: {}]   ;;  %s950_s2 = inlined_call_operand.hbm [shape: f32[2,1,64], index: 2, kind: output, shape index: {}]  }
   0x1   :  { %9 = vsyncpa [#allocation4 + $0x1], 0  ;;  %s778_s9 = smov 0   ;;  %s780_s10 = smov 0  }
   0x2   :  { %s782_s11 = smov 0   ;;  %s784_s12 = smov 0  }
   0x3   :  { %s786_s13 = smov 0   ;;  %s788_s14 = smov 0  }
   0x4   :  { %s790_s15 = smov 0   ;;  %s792_s16 = smov 0  }
   0x5 LB: > { %s520_s17 = sadd.s32 4294967295, %s759_s16   ;;  %s521_s18 = sadd.s32 4294967294, %s759_s16   ;;  %s759_s16 = sphi %s792_s16, %s15_s16   ;;  %s755_s15 = sphi %s790_s15, %s959_s15   ;;  %s751_s14 = sphi %s788_s14, %s958_s14   ;;  %s747_s13 = sphi %s786_s13, %s957_s13   ;;  %s743_s12 = sphi %s784_s12, %s956_s12   ;;  %s739_s11 = sphi %s782_s11, %s955_s11   ;;  %s735_s10 = sphi %s780_s10, %s954_s10   ;;  %s731_s9 = sphi %s778_s9, %s953_s9  }
   0x6   : > { %s24_s19 = sadd.s32 1, %s751_s14  ;;  %s27_s20 = sadd.s32 1, %s755_s15 }
   0x7   : > { %p25_p0 = scmp.ge.s32.totalorder %s24_s19, 2  ;;  %p93_p1 = scmp.ne.s32.totalorder %s739_s11, %s735_s10 }
   0x8   : > { %p94_p2 = scmp.eq.s32.totalorder %s520_s17, 3  ;;  %p99_p4 = scmp.ne.s32.totalorder %s735_s10, %s731_s9 }
   0x9   : > { %s961_s19 = smov (%p25_p0, %s24_s19), 0  ;;  %s963_s20 = smov (!%p25_p0, %s27_s20), %s755_s15 }
   0xa   : > { %p827_p3 = por %p94_p2, %p93_p1  ;;  %p29_p5 = scmp.ge.s32.totalorder %s963_s20, 2 }
   0xb   : > { %p100_p6 = scmp.eq.s32.totalorder %s521_s18, 3  ;;  %p524_p7 = scmp.ge.s32.totalorder %s759_s16, 1 }
   0xc   : > { %p134_p8 = scmp.lt.s32.totalorder %s759_s16, 5  ;;  %s965_s20 = smov (%p29_p5, %s963_s20), 0 }
   0xd   : > { %p837_p9 = por %p100_p6, %p99_p4  ;;  %s80_s23 = ssub.s32 %s755_s15, %s965_s20 }
   0xe   : > { %p135_p10 = pnand %p524_p7, %p134_p8  ;;  %s83_s24 = sadd.s32 1, %s739_s11 }
   0xf   : > { %p81_p11 = scmp.eq.s32.totalorder %s80_s23, 0  ;;  %s157_s26 = sand.u32 (!%p135_p10), 1, %s735_s10  }
  0x10   : > { %138 = sbr.rel (%p135_p10) target bundleno = 318 (0x13e), region = 28  ;;  %s525_s27 = sshll.u32 (!%p135_p10), %s743_s12, 4 }
  0x11   : > { %s845_s25 = scalar_select %p81_p11, %s739_s11, %s83_s24  }
  0x12   : > { %p160_p12 = scmp.lt.s32.totalorder (!%p135_p10), %s747_s13, 1  ;;  %p162_p13 = scmp.lt.s32.totalorder (!%p135_p10), %s525_s27, 31 }
  0x13   : > { %s858_s7 = scalar_lea.vmem (!%p135_p10), [#allocation3], %s157_s26  ;;  %p528_p0 = scmp.ne.s32.totalorder (!%p135_p10), %s743_s12, 0 }
  0x15   : > { %s161_s28 = scalar_select %p160_p12, %s747_s13, 1 }
  0x16   : > { %s967_s27 = smov (!%p162_p13, %s525_s27), 31  ;;  %173 = sbr.rel (%p528_p0) target bundleno = 29 (0x1d), region = 32 }
  0x17   : > { %s526_s29 = sshll.u32 %s161_s28, 5 }
  0x18   : > { %s165_s30 = sadd.s32 %s526_s29, %s967_s27 }
  0x19   : > { %s527_s3 = sshll.u32 %s165_s30, 2 }
  0x1a   : > { %s854_s6 = scalar_lea.vmem %s948_s0, %s527_s3 }
  0x1b   : > { %vm174_vm0 = vcmask 516096   ;;  %v761_v0 = vmov 0.0  }
  0x1c   : > { %175 = vst.msk [vmem:[#allocation2] sm:$0x1] %vm174_vm0, %v761_v0 }
  0x1d PF: > { %v657_v1 = vld [vmem:[%s949_s1 + $0x8] sm:$0xff]   ;;  %v658_v2 = vld [vmem:[%s949_s1] sm:$0xff]   ;;  %vm248_vm1 = vcmask 261120   ;;  %v661_v5 = vld [vmem:[%s854_s6 + $0x10] sm:$0xff]   ;;  %vm387_vm2 = vcmask 523264   ;;  %vm426_vm3 = vcmask 516096  }
  0x1e   : > { %561 = vmatprep.subr.bf16.mxu0 %v657_v1  ;;  %v659_v3 = vld [vmem:[%s854_s6] sm:$0xff]   ;;  %581 = vmatprep.subr.bf16.mxu1 %v657_v1  ;;  %v660_v4 = vld [vmem:[%s854_s6 + $0x8] sm:$0xff]   ;;  %v665_v8 = vld [vmem:[%s854_s6 + $0x30] sm:$0xff]   ;;  %p547_p1 = scmp.ne.s32.totalorder %s743_s12, 1 }
  0x1f   : > { %562 = vmatpush3.bf16.msra.mxu0 %v657_v1  ;;  %583 = vmatpush3.bf16.msra.mxu1 %v657_v1  ;;  %v663_v6 = vld [vmem:[%s854_s6 + $0x20] sm:$0xff]   ;;  %v664_v7 = vld [vmem:[%s854_s6 + $0x28] sm:$0xff]   ;;  %v662_v9 = vld [vmem:[%s854_s6 + $0x18] sm:$0xff]  }
  0x20   : > { %563 = vmatprep.subr.bf16.mxu0 %v658_v2  ;;  %565 = vmatprep.mubr.msk.bf16.mxu0 %vm248_vm1, %v659_v3  ;;  %v666_v10 = vld [vmem:[%s854_s6 + $0x38] sm:$0xff]  }
  0x21   : > { %582 = vmatprep.subr.bf16.mxu1 %v658_v2  ;;  %573 = vmatprep.mubr.msk.bf16.mxu1 %vm248_vm1, %v663_v6 }
  0x23   : > { %564 = vmatpush3.bf16.msra.mxu0 %v658_v2  ;;  %584 = vmatpush3.bf16.msra.mxu1 %v658_v2 }
  0x26   : > { %566 = vmatmul.mubr.msk.bf16.vlgmr.msra.gmra.mxu0 %vm248_vm1, %v660_v4  ;;  %574 = vmatmul.mubr.msk.bf16.vlgmr.msra.gmra.mxu1 %vm248_vm1, %v664_v7 }
  0x27   : > { %569 = vmatprep.mubr.msk.bf16.mxu0 %vm248_vm1, %v661_v5  ;;  %577 = vmatprep.mubr.msk.bf16.mxu1 %vm248_vm1, %v665_v8 }
  0x2e   : > { %570 = vmatmul.mubr.msk.bf16.gmra.mxu0 %vm248_vm1, %v662_v9  ;;  %578 = vmatmul.mubr.msk.bf16.gmra.mxu1 %vm248_vm1, %v666_v10 }
  0xe6   : > { %v567_v11 = vpop.f32.mrf.mxu0  ;;  %v575_v12 = vpop.f32.mrf.mxu1 }
  0xe7   : > { %v372_v19 = vmax.f32 %v567_v11, 0.0  ;;  %v380_v51 = vmax.f32 %v575_v12, 0.0 }
  0xe8   : > { %v307_v13 = vpop.f32.mrf.mxu0  ;;  %v339_v14 = vpop.f32.mrf.mxu1 }
  0xe9   : > { %v370_v16 = vmax.f32 %v307_v13, 0.0  ;;  %v391_v28 = vsel %vm387_vm2, %v372_v19, 0.0  ;;  %v378_v45 = vmax.f32 %v339_v14, 0.0  ;;  %v407_v58 = vsel %vm387_vm2, %v380_v51, 0.0 }
  0xea   : > { %v568_v15 = vpop.f32.mrf.mxu0  ;;  %v576_v18 = vpop.f32.mrf.mxu1 }
  0xeb   : > { %v388_v22 = vsel %vm387_vm2, %v370_v16, 0.0  ;;  %v373_v23 = vmax.f32 %v568_v15, 0.0  ;;  %v403_v52 = vsel %vm387_vm2, %v378_v45, 0.0  ;;  %v381_v54 = vmax.f32 %v576_v18, 0.0  ;;  %v386_v15 = vld [vmem:[#allocation2] sm:$0x1] }
  0xec   : > { %v310_v17 = vpop.f32.mrf.mxu0  ;;  %v342_v27 = vpop.f32.mrf.mxu1 }
  0xed   : > { %v371_v20 = vmax.f32 %v310_v17, 0.0  ;;  %v393_v32 = vsel %vm387_vm2, %v373_v23, 0.0  ;;  %v379_v48 = vmax.f32 %v342_v27, 0.0  ;;  %v409_v61 = vsel %vm387_vm2, %v381_v54, 0.0 }
  0xee   : > { %v571_v21 = vpop.f32.mrf.mxu0  ;;  %v579_v35 = vpop.f32.mrf.mxu1 }
  0xef   : > { %v389_v24 = vsel %vm387_vm2, %v371_v20, 0.0  ;;  %v376_v36 = vmax.f32 %v571_v21, 0.0  ;;  %v405_v55 = vsel %vm387_vm2, %v379_v48, 0.0  ;;  %v384_v0 = vmax.f32 %v579_v35, 0.0 }
  0xf0   : > { %v390_v25 = vadd.f32 %v389_v24, %v388_v22  ;;  %v323_v26 = vpop.f32.mrf.mxu0  ;;  %v355_v43 = vpop.f32.mrf.mxu1 }
  0xf1   : > { %v374_v29 = vmax.f32 %v323_v26, 0.0  ;;  %v399_v44 = vsel %vm387_vm2, %v376_v36, 0.0  ;;  %v382_v59 = vmax.f32 %v355_v43, 0.0  ;;  %v415_v6 = vsel %vm387_vm2, %v384_v0, 0.0 }
  0xf2   : > { %v392_v30 = vadd.f32 %v391_v28, %v390_v25  ;;  %v572_v31 = vpop.f32.mrf.mxu0  ;;  %v580_v50 = vpop.f32.mrf.mxu1 }
  0xf3   : > { %v395_v37 = vsel %vm387_vm2, %v374_v29, 0.0  ;;  %v377_v40 = vmax.f32 %v572_v31, 0.0  ;;  %v411_v1 = vsel %vm387_vm2, %v382_v59, 0.0  ;;  %v385_v3 = vmax.f32 %v580_v50, 0.0 }
  0xf4   : > { %v394_v33 = vadd.f32 %v393_v32, %v392_v30  ;;  %v326_v34 = vpop.f32.mrf.mxu0  ;;  %v358_v57 = vpop.f32.mrf.mxu1 }
  0xf5   : > { %v375_v38 = vmax.f32 %v326_v34, 0.0  ;;  %v401_v47 = vsel %vm387_vm2, %v377_v40, 0.0  ;;  %v383_v62 = vmax.f32 %v358_v57, 0.0  ;;  %v417_v8 = vsel %vm387_vm2, %v385_v3, 0.0 }
  0xf6   : > { %v396_v39 = vadd.f32 %v395_v37, %v394_v33 }
  0xf7   : > { %v397_v41 = vsel %vm387_vm2, %v375_v38, 0.0  ;;  %v413_v4 = vsel %vm387_vm2, %v383_v62, 0.0 }
  0xf8   : > { %v398_v42 = vadd.f32 %v397_v41, %v396_v39 }
  0xfa   : > { %v400_v46 = vadd.f32 %v399_v44, %v398_v42 }
  0xfc   : > { %v402_v49 = vadd.f32 %v401_v47, %v400_v46 }
  0xfe   : > { %v404_v53 = vadd.f32 %v403_v52, %v402_v49 }
 0x100   : > { %v406_v56 = vadd.f32 %v405_v55, %v404_v53 }
 0x102   : > { %v408_v60 = vadd.f32 %v407_v58, %v406_v56 }
 0x104   : > { %v410_v63 = vadd.f32 %v409_v61, %v408_v60 }
 0x106   : > { %v412_v2 = vadd.f32 %v411_v1, %v410_v63 }
 0x108   : > { %v414_v5 = vadd.f32 %v413_v4, %v412_v2 }
 0x10a   : > { %v416_v7 = vadd.f32 %v415_v6, %v414_v5 }
 0x10c   : > { %v418_v9 = vadd.f32 %v417_v8, %v416_v7 }
 0x10e   : > { %v419_v10 = vrot.slane %v418_v9, 4 }
 0x110   : > { %v420_v11 = vadd.f32 %v419_v10, %v418_v9 }
 0x112   : > { %v421_v12 = vrot.slane %v420_v11, 2 }
 0x114   : > { %v422_v13 = vadd.f32 %v421_v12, %v420_v11 }
 0x116   : > { %v423_v14 = vrot.slane %v422_v13, 1 }
 0x118   : > { %v424_v16 = vadd.f32 %v423_v14, %v422_v13  ;;  %431 = sbr.rel (%p547_p1) target bundleno = 295 (0x127), region = 36 }
 0x11a   : > { %v425_v17 = vadd.f32 %v424_v16, %v386_v15 }
 0x11c   : > { %427 = vst.msk [vmem:[#allocation2] sm:$0x1] %vm426_vm3, %v425_v17 }
 0x123   : > { %v432_v18 = vld [vmem:[#allocation2] sm:$0x1] }
 0x124   : > { %v433_v19 = vmul.f32 0.00390625, %v432_v18 }
 0x126   : > { %434 = vst.msk [vmem:[%s858_s7] sm:$0x1] %vm426_vm3, %v433_v19 }
 0x127 PF: > { %s548_s24 = sshll.u32 %s747_s13, 4  ;;  %s448_s30 = sshll.u32 %s858_s7, 4  ;;  %s449_s30 = int_to_ptr.vmem [resolvable:$true] %s448_s30 }
 0x128   : > { %s446_s29 = scalar_lea.hbm %s950_s2, %s548_s24  ;;  %s436_s3 = scalar_lea.sflag [#allocation4], %s157_s26 }
 0x129   : > { %s667_s12 = scalar_lea.vmem %s449_s30, 16  ;;  %s762_s4 = smov [#allocation3]  }
 0x12a   : > { %p668_p2 = scmp.ne.s32.totalorder %s449_s30, %s667_s12  ;;  %s671_s5 = sshll.u32 %s762_s4, 4  ;;  %s672_s5 = int_to_ptr.vmem [resolvable:$false] %s671_s5 }
 0x12b   : > { %s673_s6 = scalar_lea.vmem %s672_s5, 32  ;;  %p674_p6 = scmp.lt.s32.totalorder %s449_s30, %s672_s5 }
 0x12c   : > { %p669_p4 = pnand %p668_p2, %p827_p3  ;;  %p675_p7 = scmp.lt.s32.totalorder %s673_s6, %s667_s12 }
 0x12e   : > { %p670_p5 = pneg %p669_p4  ;;  %p676_p8 = por %p675_p7, %p674_p6 }
 0x130   : > { %p677_p10 = pnand %p676_p8, %p670_p5 }
 0x132   : > { %680 = shalt.err (!%p677_p10)
}
 0x133   : > { %s681_s13 = scalar_lea.hbm %s446_s29, 16  ;;  %s685_s8 = scalar_lea.hbm %s950_s2, 32 }
 0x134   : > { %p682_p11 = scmp.ne.s32.totalorder %s446_s29, %s681_s13  ;;  %p686_p0 = scmp.lt.s32.totalorder %s446_s29, %s950_s2 }
 0x135   : > { %p687_p1 = scmp.lt.s32.totalorder %s685_s8, %s681_s13 }
 0x136   : > { %p683_p12 = pnand %p682_p11, %p827_p3 }
 0x137   : > { %p688_p2 = por %p687_p1, %p686_p0 }
 0x138   : > { %p684_p13 = pneg %p683_p12 }
 0x13a   : > { %p689_p4 = pnand %p688_p2, %p684_p13 }
 0x13c   : > { %692 = shalt.err (!%p689_p4)
}
 0x13d   : > { %585 = dma.vmem_to_hbm [thread:$0]  (%p827_p3), %s449_s30, 16, %s446_s29, %s436_s3  }
 0x13e PF: > { %p591_p5 = scmp.ge.s32.totalorder %s759_s16, 2  ;;  %s460_s23 = sand.u32 1, %s731_s9  }
 0x13f   : > { %s461_s24 = scalar_lea.sflag [#allocation4], %s460_s23 }
 0x140   : > { %p588_p6 = pnand %p591_p5, %p837_p9 }
 0x142   : > { %p589_p7 = pneg %p588_p6 }
 0x144   : > { %726 = dma.done.wait (%p589_p7), %s461_s24, 16  }
 0x145   : > { %728 = vsyncadd (%p589_p7), %s461_s24, 4294967280  ;;  %s15_s16 = sadd.s32 1, %s759_s16   ;;  %s953_s9 = smov %s735_s10 }
 0x146   : > { %p12_p8 = scmp.ge.s32.totalorder %s15_s16, 6   ;;  %s954_s10 = smov %s739_s11 }
 0x147   : > { %s955_s11 = smov %s845_s25  ;;  %s956_s12 = smov %s751_s14 }
 0x148   : > { %s957_s13 = smov %s755_s15  ;;  %s958_s14 = smov %s961_s19 }
 0x149   : > { %s959_s15 = smov %s965_s20  ;;  %14 = sbr.rel (!%p12_p8) target bundleno = 5 (0x5), region = 71 }
 0x14e   :  { %465 = vsyncpa [#allocation4], 1 }
 0x14f   :  { %467 = vsyncpa [#allocation4 + $0x1], 1 }

</bundles_post_ra>
